<compile_context>
chip_gen: v6e
topology: v6e:2x2x1
jax: 0.10.0
libtpu: 0.0.40
codegen_flags: <defaults>
</compile_context>

<pallas_src>
import functools

import jax
import jax.numpy as jnp
from jax.experimental import pallas as pl
from jax.experimental.pallas import tpu as pltpu


# ---------------------------------------------------------------------------
# Kernel 1: fused projection (Linear -> ELU -> Linear) + row normalization.
# ---------------------------------------------------------------------------
def _proj_kernel(z_ref, w1t_ref, b1_ref, w2t_ref, b2_ref, out_ref):
    z = z_ref[...].astype(jnp.float32)
    h = jnp.dot(z, w1t_ref[...], preferred_element_type=jnp.float32) + b1_ref[...]
    # ELU (alpha = 1); clamp the exp argument so the unselected lane never infs.
    h = jnp.where(h > 0.0, h, jnp.exp(jnp.minimum(h, 0.0)) - 1.0)
    p = jnp.dot(h, w2t_ref[...], preferred_element_type=jnp.float32) + b2_ref[...]
    # Pre-normalize rows so the similarity kernel is just exp(dot / tau).
    sumsq = jnp.sum(p * p, axis=-1, keepdims=True)
    out_ref[...] = p * jax.lax.rsqrt(sumsq)


# ---------------------------------------------------------------------------
# Kernel 2: row-tiled similarity + both loss directions (log domain).
# ---------------------------------------------------------------------------
def _sim_loss_kernel(zmn_ref, zsn_ref, pos_ref, post_ref, out_ref,
                     mp_acc, sc_sum_acc, sc_mask_acc,
                     *, n_valid, inv_tau, lam):
    i = pl.program_id(0)
    tm = zmn_ref.shape[0]
    n_pad = zsn_ref.shape[0]
    need_mask = (n_valid != n_pad)          # static (trace-time) decision

    @pl.when(i == 0)
    def _init():
        mp_acc[...] = jnp.zeros_like(mp_acc)
        sc_sum_acc[...] = jnp.zeros_like(sc_sum_acc)
        sc_mask_acc[...] = jnp.zeros_like(sc_mask_acc)

    # Cosine similarities of pre-normalized projections.  Contracting dims
    # (1, 1) avoids materializing zsn.T before the MXU.
    dot = jax.lax.dot_general(
        zmn_ref[...], zsn_ref[...],
        dimension_numbers=(((1,), (1,)), ((), ())),
        preferred_element_type=jnp.float32)                  # (tm, n_pad)
    sim = jnp.exp(dot * inv_tau)

    row_valid = None
    col_valid = None
    if need_mask:
        row_ids = i * tm + jax.lax.broadcasted_iota(jnp.int32, (tm, 1), 0)
        col_ids = jax.lax.broadcasted_iota(jnp.int32, (1, n_pad), 1)
        row_valid = row_ids < n_valid
        col_valid = col_ids < n_valid
        sim = jnp.where(jnp.logical_and(row_valid, col_valid), sim, 0.0)

    pos_m = pos_ref[...] != 0
    post_m = post_ref[...] != 0

    # mp -> sc (row direction), log domain: no N^2 divides, no normalized copy.
    row_sum = jnp.sum(sim, axis=1, keepdims=True)            # (tm, 1)
    row_pos = jnp.sum(jnp.where(pos_m, sim, 0.0), axis=1, keepdims=True)
    mp_terms = jnp.log(row_sum + 1e-8) - jnp.log(row_pos)
    if need_mask:
        mp_terms = jnp.where(row_valid, mp_terms, 0.0)
    mp_acc[...] += jnp.sum(mp_terms, axis=0, keepdims=True)   # (1, 1)

    # sc -> mp (column direction): column partial sums of the SAME sim tile.
    # pos.T is supplied pre-transposed from the host, so no in-kernel transpose.
    sc_sum_acc[...] += jnp.sum(sim, axis=0, keepdims=True)
    sc_mask_acc[...] += jnp.sum(jnp.where(post_m, sim, 0.0), axis=0, keepdims=True)

    @pl.when(i == pl.num_programs(0) - 1)
    def _finalize():
        sc_terms = jnp.log(sc_sum_acc[...] + 1e-8) - jnp.log(sc_mask_acc[...])
        if need_mask:
            sc_use = jnp.where(col_valid, sc_terms, 0.0)
        else:
            sc_use = sc_terms
        lori_sc = jnp.sum(sc_use, axis=1, keepdims=True)      # (1, 1)
        out_ref[...] = (lam * mp_acc[...] + (1.0 - lam) * lori_sc) * (1.0 / n_valid)


# ---------------------------------------------------------------------------
# Host wrapper
# ---------------------------------------------------------------------------
def _round_up(x, m):
    return ((x + m - 1) // m) * m


def _choose_tiles(n, row_tile=256):
    """Row tile for the N x N part. 256 keeps the int8 (32,128) min-tile and
    fits comfortably in v7x's smaller (64 MiB) VMEM at realistic N."""
    if n <= row_tile:
        n_pad = _round_up(n, 8)
        return n_pad, n_pad
    n_pad = _round_up(n, row_tile)
    return n_pad, row_tile


def _pad_rows(x, n_pad):
    n = x.shape[0]
    if n_pad == n:
        return x
    return jnp.pad(x, ((0, n_pad - n), (0, 0)))


def contrast_forward(z_mp, z_sc, pos, params, *, tau, lam,
                     row_tile=256, mxu_dtype=jnp.float32):
    w1, b1, w2, b2 = params
    n, hidden = z_mp.shape
    n_pad, tm = _choose_tiles(n, row_tile)

    # Pre-transpose linear weights on host so the kernel does plain x @ Wt.
    w1t = w1.T
    w2t = w2.T
    b1r = b1.reshape(1, -1)
    b2r = b2.reshape(1, -1)

    # pos as int8 (4x less HBM/VMEM than f32); pos.T transposed on the host.
    pos_i8 = (pos != 0).astype(jnp.int8)
    if n_pad != n:
        pos_i8 = jnp.pad(pos_i8, ((0, n_pad - n), (0, n_pad - n)))
    pos_t_i8 = pos_i8.T

    # ---------------- projection (both views fused into one [2N, H] pass) ----
    z_cat = jnp.concatenate([_pad_rows(z_mp, n_pad), _pad_rows(z_sc, n_pad)],
                            axis=0)                               # (2*n_pad, H)
    rows = 2 * n_pad
    grid_p = (rows // tm,)

    proj_norm = pl.pallas_call(
        _proj_kernel,
        out_shape=jax.ShapeDtypeStruct((rows, hidden), jnp.float32),
        grid=grid_p,
        in_specs=[
            pl.BlockSpec((tm, hidden), lambda i: (i, 0)),
            pl.BlockSpec((hidden, hidden), lambda i: (0, 0)),
            pl.BlockSpec((1, hidden), lambda i: (0, 0)),
            pl.BlockSpec((hidden, hidden), lambda i: (0, 0)),
            pl.BlockSpec((1, hidden), lambda i: (0, 0)),
        ],
        out_specs=pl.BlockSpec((tm, hidden), lambda i: (i, 0)),
        compiler_params=pltpu.CompilerParams(
            dimension_semantics=("parallel",)),
        cost_estimate=pl.CostEstimate(
            flops=int(4 * rows * hidden * hidden + 8 * rows * hidden),
            transcendentals=int(rows * hidden + rows),
            bytes_accessed=int(2 * rows * hidden * 4 + 2 * hidden * hidden * 4)),
    )(z_cat, w1t, b1r, w2t, b2r)

    zmn = proj_norm[:n_pad].astype(mxu_dtype)
    zsn = proj_norm[n_pad:].astype(mxu_dtype)

    # ---------------- similarity + loss (row-tiled over the N x N matrix) ----
    elt = jnp.dtype(mxu_dtype).itemsize
    vmem_est = (
        2 * tm * hidden * elt            # zmn row tiles (double buffered)
        + n_pad * hidden * elt           # zsn (resident)
        + 2 * 2 * tm * n_pad             # pos + pos.T int8 tiles (double buffered)
        + 4 * tm * n_pad * 4             # sim tile + temporaries (generous)
        + (1 + 2 * n_pad) * 4            # scratch accumulators
        + (2 << 20))                     # headroom
    vmem_limit = int(min(max(vmem_est, 8 << 20), 64 << 20))

    n_tiles = n_pad // tm
    kernel = functools.partial(
        _sim_loss_kernel,
        n_valid=int(n), inv_tau=float(1.0 / tau), lam=float(lam))

    out = pl.pallas_call(
        kernel,
        out_shape=jax.ShapeDtypeStruct((1, 1), jnp.float32),
        grid=(n_tiles,),
        in_specs=[
            pl.BlockSpec((tm, hidden), lambda i: (i, 0)),      # zmn row tile
            pl.BlockSpec((n_pad, hidden), lambda i: (0, 0)),   # zsn, resident
            pl.BlockSpec((tm, n_pad), lambda i: (i, 0)),       # pos rows (int8)
            pl.BlockSpec((tm, n_pad), lambda i: (i, 0)),       # pos.T rows (int8)
        ],
        out_specs=pl.BlockSpec((1, 1), lambda i: (0, 0)),
        scratch_shapes=[
            pltpu.VMEM((1, 1), jnp.float32),       # mp-direction accumulator
            pltpu.VMEM((1, n_pad), jnp.float32),   # column sums
            pltpu.VMEM((1, n_pad), jnp.float32),   # masked column sums
        ],
        compiler_params=pltpu.CompilerParams(
            # "arbitrary": the column-sum scratch carries across row tiles.
            dimension_semantics=("arbitrary",),
            vmem_limit_bytes=vmem_limit),
        cost_estimate=pl.CostEstimate(
            flops=int(2 * n_pad * n_pad * hidden + 10 * n_pad * n_pad),
            transcendentals=int(n_pad * n_pad + 4 * n_pad),
            bytes_accessed=int(2 * n_pad * n_pad + 2 * n_pad * hidden * elt + 4)),
    )(zmn, zsn, pos_i8, pos_t_i8)
    return out[0, 0]


# ---------------------------------------------------------------------------
# Params init (mirrors the PyTorch module) + pure-JAX reference
# ---------------------------------------------------------------------------
def init_params(key, hidden_dim):
    """nn.Linear(hidden, hidden): xavier_normal_(gain=1.414) weights,
    default uniform(-1/sqrt(fan_in), 1/sqrt(fan_in)) biases."""
    k1, k2, k3, k4 = jax.random.split(key, 4)
    gain = 1.414
    std = gain * jnp.sqrt(2.0 / (hidden_dim + hidden_dim))
    bound = 1.0 / jnp.sqrt(hidden_dim)
    w1 = std * jax.random.normal(k1, (hidden_dim, hidden_dim), jnp.float32)
    b1 = jax.random.uniform(k2, (hidden_dim,), jnp.float32, -bound, bound)
    w2 = std * jax.random.normal(k3, (hidden_dim, hidden_dim), jnp.float32)
    b2 = jax.random.uniform(k4, (hidden_dim,), jnp.float32, -bound, bound)
    return w1, b1, w2, b2


def reference_forward(z_mp, z_sc, pos, params, *, tau, lam):
    w1, b1, w2, b2 = params

    def proj(z):
        h = z @ w1.T + b1
        h = jnp.where(h > 0, h, jnp.exp(jnp.minimum(h, 0.0)) - 1.0)
        return h @ w2.T + b2

    def sim(a, b):
        an = jnp.linalg.norm(a, axis=-1, keepdims=True)
        bn = jnp.linalg.norm(b, axis=-1, keepdims=True)
        return jnp.exp((a @ b.T) / (an @ bn.T) / tau)

    zm = proj(z_mp)
    zs = proj(z_sc)
    m_mp2sc = sim(zm, zs)
    m_sc2mp = m_mp2sc.T
    m_mp2sc = m_mp2sc / (jnp.sum(m_mp2sc, axis=1, keepdims=True) + 1e-8)
    lori_mp = -jnp.log(jnp.sum(m_mp2sc * pos, axis=-1)).mean()
    m_sc2mp = m_sc2mp / (jnp.sum(m_sc2mp, axis=1, keepdims=True) + 1e-8)
    lori_sc = -jnp.log(jnp.sum(m_sc2mp * pos, axis=-1)).mean()
    return lam * lori_mp + (1 - lam) * lori_sc


if __name__ == "__main__":
    N = 8           # number of nodes
    HIDDEN = 32     # hidden_dim
    TAU = 0.8
    LAM = 0.5

    key = jax.random.PRNGKey(0)
    kp, kz1, kz2, kpos = jax.random.split(key, 4)

    params = init_params(kp, HIDDEN)
    z_mp = jax.random.normal(kz1, (N, HIDDEN), jnp.float32)
    z_sc = jax.random.normal(kz2, (N, HIDDEN), jnp.float32)

    # Dense 0/1 positive mask (the PyTorch module densifies a sparse pos).
    # Ensure the diagonal is positive so no row sum is zero (log(0) avoided).
    rand_pos = (jax.random.uniform(kpos, (N, N)) < 0.25).astype(jnp.float32)
    pos = jnp.maximum(rand_pos, jnp.eye(N, dtype=jnp.float32))

    loss = contrast_forward(z_mp, z_sc, pos, params, tau=TAU, lam=LAM)
    loss = jax.block_until_ready(loss)

    ref = reference_forward(z_mp, z_sc, pos, params, tau=TAU, lam=LAM)
    assert jnp.allclose(loss, ref, rtol=1e-4, atol=1e-4), (loss, ref)

    print("KERNEL_OK")
</pallas_src>

<mosaic_0001>
module attributes {stable_mosaic.version = 11 : i64} {
  func.func @_proj_kernel(%arg0: i32, %arg1: memref<8x32xf32, #tpu.memory_space<vmem>>, %arg2: memref<32x32xf32, #tpu.memory_space<vmem>>, %arg3: memref<1x32xf32, #tpu.memory_space<vmem>>, %arg4: memref<32x32xf32, #tpu.memory_space<vmem>>, %arg5: memref<1x32xf32, #tpu.memory_space<vmem>>, %arg6: memref<8x32xf32, #tpu.memory_space<vmem>>) attributes {dimension_semantics = [#tpu.dimension_semantics<parallel>], iteration_bounds = array<i64: 2>, scalar_prefetch = 0 : i64, scratch_operands = 0 : i64, tpu.core_type = #tpu.core_type<tc>, window_params = [{transform_indices = @transform_0, window_bounds = array<i64: 8, 32>}, {pipeline_mode = #tpu.pipeline_mode<synchronous>, transform_indices = @transform_1, window_bounds = array<i64: 32, 32>}, {pipeline_mode = #tpu.pipeline_mode<synchronous>, transform_indices = @transform_2, window_bounds = array<i64: 1, 32>}, {pipeline_mode = #tpu.pipeline_mode<synchronous>, transform_indices = @transform_3, window_bounds = array<i64: 32, 32>}, {pipeline_mode = #tpu.pipeline_mode<synchronous>, transform_indices = @transform_4, window_bounds = array<i64: 1, 32>}, {transform_indices = @transform_5, window_bounds = array<i64: 8, 32>}]} {
    %c0 = arith.constant 0 : index
    %c0_0 = arith.constant 0 : index
    %0 = vector.load %arg1[%c0, %c0_0] : memref<8x32xf32, #tpu.memory_space<vmem>>, vector<8x32xf32>
    %c0_1 = arith.constant 0 : index
    %c0_2 = arith.constant 0 : index
    %1 = vector.load %arg2[%c0_1, %c0_2] : memref<32x32xf32, #tpu.memory_space<vmem>>, vector<32x32xf32>
    %cst = arith.constant dense<0.000000e+00> : vector<8x32xf32>
    %2 = tpu.matmul %0, %1, %cst {dimension_numbers = #tpu.dot_dimension_numbers<[1], [0], [0], [1], [0, 0, 1, 1], [], []>} : vector<8x32xf32>, vector<32x32xf32>, vector<8x32xf32> -> vector<8x32xf32>
    %c0_3 = arith.constant 0 : index
    %c0_4 = arith.constant 0 : index
    %3 = vector.load %arg3[%c0_3, %c0_4] : memref<1x32xf32, #tpu.memory_space<vmem>>, vector<1x32xf32>
    %4 = vector.broadcast %3 : vector<1x32xf32> to vector<8x32xf32>
    %5 = arith.addf %2, %4 : vector<8x32xf32>
    %cst_5 = arith.constant 0.000000e+00 : f32
    %6 = vector.broadcast %cst_5 : f32 to vector<8x32xf32>
    %7 = arith.cmpf ogt, %5, %6 : vector<8x32xf32>
    %cst_6 = arith.constant 0.000000e+00 : f32
    %8 = vector.broadcast %cst_6 : f32 to vector<8x32xf32>
    %9 = arith.minimumf %5, %8 : vector<8x32xf32>
    %10 = math.exp %9 : vector<8x32xf32>
    %cst_7 = arith.constant 1.000000e+00 : f32
    %11 = vector.broadcast %cst_7 : f32 to vector<8x32xf32>
    %12 = arith.subf %10, %11 : vector<8x32xf32>
    %13 = arith.select %7, %5, %12 : vector<8x32xi1>, vector<8x32xf32>
    %c0_8 = arith.constant 0 : index
    %c0_9 = arith.constant 0 : index
    %14 = vector.load %arg4[%c0_8, %c0_9] : memref<32x32xf32, #tpu.memory_space<vmem>>, vector<32x32xf32>
    %cst_10 = arith.constant dense<0.000000e+00> : vector<8x32xf32>
    %15 = tpu.matmul %13, %14, %cst_10 {dimension_numbers = #tpu.dot_dimension_numbers<[1], [0], [0], [1], [0, 0, 1, 1], [], []>} : vector<8x32xf32>, vector<32x32xf32>, vector<8x32xf32> -> vector<8x32xf32>
    %c0_11 = arith.constant 0 : index
    %c0_12 = arith.constant 0 : index
    %16 = vector.load %arg5[%c0_11, %c0_12] : memref<1x32xf32, #tpu.memory_space<vmem>>, vector<1x32xf32>
    %17 = vector.broadcast %16 : vector<1x32xf32> to vector<8x32xf32>
    %18 = arith.addf %15, %17 : vector<8x32xf32>
    %19 = arith.mulf %18, %18 : vector<8x32xf32>
    %cst_13 = arith.constant dense<0.000000e+00> : vector<8xf32>
    %20 = vector.multi_reduction <add>, %19, %cst_13 [1] : vector<8x32xf32> to vector<8xf32>
    %21 = vector.shape_cast %20 : vector<8xf32> to vector<8x1xf32>
    %22 = math.rsqrt %21 : vector<8x1xf32>
    %23 = vector.broadcast %22 : vector<8x1xf32> to vector<8x32xf32>
    %24 = arith.mulf %18, %23 : vector<8x32xf32>
    %c0_14 = arith.constant 0 : index
    %c0_15 = arith.constant 0 : index
    %25 = vector.load %arg6[%c0_14, %c0_15] : memref<8x32xf32, #tpu.memory_space<vmem>>, vector<8x32xf32>
    tpu.vector_store %arg6[%c0_14, %c0_15], %24 {strides = array<i32>} : memref<8x32xf32, #tpu.memory_space<vmem>>, vector<8x32xf32>,
    return
  }
  func.func @transform_0(%arg0: i32) -> (i32, i32) {
    %c0_i32 = arith.constant 0 : i32
    %c0_i32_0 = arith.constant 0 : i32
    return %arg0, %c0_i32 : i32, i32
  }
  func.func @transform_1(%arg0: i32) -> (i32, i32) {
    %c0_i32 = arith.constant 0 : i32
    %c0_i32_0 = arith.constant 0 : i32
    %c0_i32_1 = arith.constant 0 : i32
    return %c0_i32, %c0_i32_0 : i32, i32
  }
  func.func @transform_2(%arg0: i32) -> (i32, i32) {
    %c0_i32 = arith.constant 0 : i32
    %c0_i32_0 = arith.constant 0 : i32
    %c0_i32_1 = arith.constant 0 : i32
    return %c0_i32, %c0_i32_0 : i32, i32
  }
  func.func @transform_3(%arg0: i32) -> (i32, i32) {
    %c0_i32 = arith.constant 0 : i32
    %c0_i32_0 = arith.constant 0 : i32
    %c0_i32_1 = arith.constant 0 : i32
    return %c0_i32, %c0_i32_0 : i32, i32
  }
  func.func @transform_4(%arg0: i32) -> (i32, i32) {
    %c0_i32 = arith.constant 0 : i32
    %c0_i32_0 = arith.constant 0 : i32
    %c0_i32_1 = arith.constant 0 : i32
    return %c0_i32, %c0_i32_0 : i32, i32
  }
  func.func @transform_5(%arg0: i32) -> (i32, i32) {
    %c0_i32 = arith.constant 0 : i32
    %c0_i32_0 = arith.constant 0 : i32
    return %arg0, %c0_i32 : i32, i32
  }
}

</mosaic_0001>

<bundles_post_ra>
// kernel: tpu_custom_call.1
= control target key start
LH: loop header
LB: loop body
LE: loop exit
PB: predicated region body
PF: predicated region fallthrough
CT: control target
= control target key end

     0   :  { %10 = vsyncpa [#allocation3], 0  ;;  %s1050_s0 = inlined_call_operand.hbm [shape: f32[16,32], index: 0, kind: input, shape index: {}]   ;;  %s1051_s1 = inlined_call_operand.hbm [shape: f32[32,32], index: 1, kind: input, shape index: {}]   ;;  %s1052_s2 = inlined_call_operand.vmem [shape: f32[1,32], index: 2, kind: input, shape index: {}]   ;;  %s1053_s3 = inlined_call_operand.hbm [shape: f32[32,32], index: 3, kind: input, shape index: {}]   ;;  %s1054_s4 = inlined_call_operand.vmem [shape: f32[1,32], index: 4, kind: input, shape index: {}]   ;;  %s1055_s5 = inlined_call_operand.hbm [shape: f32[16,32], index: 5, kind: output, shape index: {}]  }
   0x1   :  { %12 = vsyncpa [#allocation3 + $0x1], 0 }
   0x2   :  { %13 = vsyncpa [#allocation6], 0 }
   0x3   :  { %14 = vsyncpa [#allocation4], 0 }
   0x4   :  { %16 = vsyncpa [#allocation4 + $0x1], 0  ;;  %s871_s18 = smov 0   ;;  %s873_s19 = smov 0  }
   0x5   :  { %s875_s20 = smov 0   ;;  %s877_s21 = smov 0  }
   0x6 LB: > { %s892_s22 = sadd.s32 4294967295, %s831_s21   ;;  %s555_s23 = sadd.s32 4294967294, %s831_s21   ;;  %s831_s21 = sphi %s877_s21, %s1077_s21   ;;  %s827_s20 = sphi %s875_s20, %s1076_s20   ;;  %s823_s19 = sphi %s873_s19, %s1075_s19   ;;  %s819_s18 = sphi %s871_s18, %s1074_s18  }
   0x7   : > { %p42_p0 = scmp.ne.s32.totalorder %s823_s19, %s819_s18  ;;  %p1056_p1 = scmp.eq.s32.totalorder %s892_s22, 0 }
   0x8   : > { %p156_p3 = scmp.eq.s32.totalorder %s555_s23, 1  ;;  %p556_p5 = scmp.ge.s32.totalorder %s831_s21, 1 }
   0x9   : > { %p901_p4 = por %p1056_p1, %p42_p0  ;;  %p163_p7 = scmp.lt.s32.totalorder %s831_s21, 3 }
   0xa   : > { %p906_p6 = por %p156_p3, %p42_p0  ;;  %s833_s27 = smov [#allocation5]  }
   0xb   : > { %s1060_s24 = scalar_select %p901_p4, 1, 0 }
   0xc   : > { %s1061_s25 = scalar_select %p906_p6, 1, 0 }
   0xd   : > { %p911_p8 = pnand %p556_p5, %p163_p7  ;;  %s175_s28 = sshll.u32 %s833_s27, 4  ;;  %s176_s28 = int_to_ptr.vmem [resolvable:$true] %s175_s28 }
   0xe   : > { %s834_s30 = smov [#allocation7]   ;;  %s694_s7 = scalar_lea.vmem %s176_s28, 512 }
   0xf   : > { %s1062_s26 = scalar_select %p911_p8, 1, 0 }
  0x10   : > { %p620_p9 = pneg %p911_p8  ;;  %s191_s6 = sshll.u32 %s834_s30, 4  ;;  %s192_s6 = int_to_ptr.vmem [resolvable:$true] %s191_s6 }
  0x11   : > { %p695_p13 = scmp.ne.s32.totalorder %s176_s28, %s694_s7  ;;  %p702_p5 = scmp.lt.s32.totalorder %s176_s28, %s176_s28 }
  0x12   : > { %p920_p11 = pnand %p620_p9, %p1056_p1  ;;  %p703_p7 = scmp.lt.s32.totalorder %s694_s7, %s694_s7 }
  0x14   : > { %p685_p12 = pneg %p920_p11  ;;  %p704_p10 = por %p703_p7, %p702_p5 }
  0x16   : > { %p697_p0 = pnand %p695_p13, %p685_p12 }
  0x18   : > { %p698_p3 = pneg %p697_p0 }
  0x1a   : > { %p705_p9 = pnand %p704_p10, %p698_p3 }
  0x1c   : > { %708 = shalt.err (!%p705_p9)
}
  0x1d   : > { %s835_s8 = smov 128   ;;  %s836_s9 = smov 8  }
  0x1e   : > { %623 = dma.hbm_to_vmem [thread:$0]  (!%p920_p11), %s1051_s1, 512, %s176_s28, [#allocation6], %s835_s8, %s835_s8, %s836_s9  }
  0x1f   : > { %s720_s12 = scalar_lea.vmem %s192_s6, 512  ;;  %p728_p2 = scmp.lt.s32.totalorder %s192_s6, %s192_s6 }
  0x20   : > { %p721_p1 = scmp.ne.s32.totalorder %s192_s6, %s720_s12  ;;  %p729_p6 = scmp.lt.s32.totalorder %s720_s12, %s720_s12 }
  0x22   : > { %p723_p13 = pnand %p721_p1, %p685_p12  ;;  %p730_p5 = por %p729_p6, %p728_p2 }
  0x24   : > { %p724_p0 = pneg %p723_p13 }
  0x26   : > { %p731_p10 = pnand %p730_p5, %p724_p0 }
  0x28   : > { %734 = shalt.err (!%p731_p10)
}
  0x29   : > { %626 = dma.hbm_to_vmem [thread:$0]  (!%p920_p11), %s1053_s3, 512, %s192_s6, [#allocation6], %s835_s8, %s835_s8, %s836_s9  }
  0x2a   : > { %s943_s15 = sadd.s32 1, %s831_s21   ;;  %s29_s16 = sadd.s32 1, %s827_s20 }
  0x2b   : > { %s26_s17 = ssub.s32 %s831_s21, %s943_s15  ;;  %p36_p1 = scmp.ne.s32.totalorder %s827_s20, %s823_s19 }
  0x2c   : > { %p27_p2 = scmp.eq.s32.totalorder %s26_s17, 0  ;;  %p37_p6 = scmp.eq.s32.totalorder %s831_s21, 0 }
  0x2d   : > { %p1064_p12 = scmp.eq.s32.totalorder %s892_s22, 1  ;;  %p637_p7 = scmp.lt.s32.totalorder %s831_s21, 2 }
  0x2e   : > { %s959_s27 = scalar_select %p27_p2, %s827_s20, %s29_s16  }
  0x2f   : > { %p953_p3 = por %p1064_p12, %p36_p1  ;;  %p38_p9 = por %p37_p6, %p36_p1 }
  0x30   : > { %s208_s28 = sand.u32 1, %s827_s20   ;;  %s561_s30 = sshll.u32 %s831_s21, 7 }
  0x31   : > { %s1065_s23 = scalar_select %p953_p3, 1, 0 }
  0x32   : > { %s560_s29 = sshll.u32 %s208_s28, 3  ;;  %s966_s8 = scalar_lea.hbm %s1050_s0, %s561_s30 }
  0x33   : > { %s212_s9 = scalar_lea.vmem [#allocation2], %s560_s29  ;;  %p968_p11 = pnand %p637_p7, %p38_p9 }
  0x34   : > { %s219_s10 = sshll.u32 %s212_s9, 4  ;;  %s209_s12 = scalar_lea.sflag [#allocation3], %s208_s28  ;;  %s220_s10 = int_to_ptr.vmem [resolvable:$true] %s219_s10 }
  0x35   : > { %s735_s13 = scalar_lea.hbm %s966_s8, 128  ;;  %p737_p0 = pneg %p968_p11 }
  0x36   : > { %p736_p13 = scmp.ne.s32.totalorder %s966_s8, %s735_s13  ;;  %s740_s17 = scalar_lea.hbm %s1050_s0, 256 }
  0x37   : > { %p741_p1 = scmp.lt.s32.totalorder %s966_s8, %s1050_s0  ;;  %p742_p2 = scmp.lt.s32.totalorder %s740_s17, %s735_s13 }
  0x38   : > { %p738_p5 = pnand %p737_p0, %p736_p13 }
  0x39   : > { %p743_p6 = por %p742_p2, %p741_p1 }
  0x3a   : > { %p739_p10 = pneg %p738_p5 }
  0x3c   : > { %p744_p12 = pnand %p743_p6, %p739_p10 }
  0x3e   : > { %747 = shalt.err (!%p744_p12)
}
  0x3f   : > { %s748_s6 = scalar_lea.vmem %s220_s10, 128  ;;  %s837_s28 = smov [#allocation2]  }
  0x40   : > { %p749_p7 = scmp.ne.s32.totalorder %s220_s10, %s748_s6  ;;  %s753_s7 = sshll.u32 %s837_s28, 4  ;;  %s754_s7 = int_to_ptr.vmem [resolvable:$false] %s753_s7 }
  0x41   : > { %s755_s9 = scalar_lea.vmem %s754_s7, 256  ;;  %p756_p13 = scmp.lt.s32.totalorder %s220_s10, %s754_s7 }
  0x42   : > { %p751_p9 = pnand %p749_p7, %p737_p0  ;;  %p757_p5 = scmp.lt.s32.totalorder %s755_s9, %s748_s6 }
  0x44   : > { %p752_p3 = pneg %p751_p9  ;;  %p758_p4 = por %p757_p5, %p756_p13 }
  0x46   : > { %p759_p8 = pnand %p758_p4, %p752_p3 }
  0x48   : > { %762 = shalt.err (!%p759_p8)
}
  0x49   : > { %630 = dma.hbm_to_vmem [thread:$0]  (!%p968_p11), %s966_s8, 128, %s220_s10, %s209_s12  }
  0x4a   : > { %p1067_p10 = scmp.ne.s32.totalorder %s1062_s26, 0 }
  0x4b   : > { %s989_s13 = sand.u32 (!%p1067_p10), 1, %s823_s19   ;;  %p1068_p4 = scmp.ne.s32.totalorder (!%p1067_p10), %s1060_s24, 0 }
  0x4c   : > { %228 = sbr.rel (%p1067_p10) target bundleno = 676 (0x2a4), region = 40  ;;  %s563_s14 = sshll.u32 (!%p1067_p10), %s989_s13, 3 }
  0x4d   : > { %s231_s16 = scalar_lea.sflag (!%p1067_p10), [#allocation3], %s989_s13  ;;  %s234_s17 = scalar_lea.vmem (!%p1067_p10), [#allocation2], %s563_s14 }
  0x51   : > { %806 = dma.done.wait (%p1068_p4), %s231_s16, 128  }
  0x52   : > { %808 = vsyncadd (%p1068_p4), %s231_s16, 4294967168  ;;  %p1069_p8 = scmp.eq.s32.totalorder %s892_s22, 0 }
  0x54   : > { %810 = dma.done.wait (%p1069_p8), [#allocation6], 1024   ;;  %p1070_p3 = pmov %p1069_p8 }
  0x55   : > { %v838_v0 = vmov 0.0   ;;  %vm839_vm0 = vmmov 0   ;;  %v273_v1 = vld [vmem:[#allocation5 + $0x18] sm:$0xff]  ;;  %v272_v2 = vld [vmem:[#allocation5 + $0x10] sm:$0xff]  ;;  %v271_v3 = vld [vmem:[#allocation5 + $0x8] sm:$0xff]  ;;  %vm281_vm1 = vcmask 261120  }
  0x56   : > { %812 = vsyncadd (%p1070_p3), [#allocation6], 4294966272  ;;  %586 = vmatprep.subr.mxu0 %v838_v0  ;;  %594 = vmatprep.mubr.msk.f32.mxu0 %vm839_vm0, %v838_v0  ;;  %v270_v4 = vld [vmem:[#allocation5] sm:$0xff]  ;;  %v269_v5 = vld [vmem:[%s234_s17] sm:$0xff]  ;;  %s573_s11 = sshll.u32 %s892_s22, 7  ;;  %s268_s12 = scalar_lea.vmem [#allocation8], %s563_s14 }
  0x57   : > { %597 = vmatprep.subr.mxu1 %v838_v0  ;;  %605 = vmatprep.mubr.msk.f32.mxu1 %vm839_vm0, %v838_v0  ;;  %v364_v6 = vld [vmem:[#allocation7 + $0x18] sm:$0xff]  ;;  %v363_v7 = vld [vmem:[#allocation7 + $0x10] sm:$0xff]  ;;  %v362_v8 = vld [vmem:[#allocation7 + $0x8] sm:$0xff]  ;;  %s466_s30 = sshll.u32 %s268_s12, 4  ;;  %s464_s28 = scalar_lea.hbm %s1055_s5, %s573_s11  ;;  %s467_s30 = int_to_ptr.vmem [resolvable:$true] %s466_s30 }
  0x58   : > { %587 = vmatpush3.msra.mxu0 %v273_v1  ;;  %598 = vmatpush3.msra.mxu1 %v364_v6  ;;  %v361_v9 = vld [vmem:[#allocation7] sm:$0xff]  ;;  %v567_v10 = vld [vmem:[%s1052_s2] ss:$0 sm:$0xff]  ;;  %s453_s7 = scalar_lea.sflag [#allocation4], %s989_s13  ;;  %s763_s9 = scalar_lea.vmem %s467_s30, 128 }
  0x59   : > { %588 = vmatprep.subr.mxu0 %v838_v0  ;;  %599 = vmatprep.subr.mxu1 %v838_v0  ;;  %v570_v19 = vld [vmem:[%s1054_s4] ss:$0 sm:$0xff]  ;;  %p764_p11 = scmp.ne.s32.totalorder %s467_s30, %s763_s9  ;;  %p1071_p0 = scmp.ne.s32.totalorder %s1065_s23, 0 }
  0x5a   : > { %589 = vmatpush3.msra.mxu0 %v272_v2  ;;  %600 = vmatpush3.msra.mxu1 %v363_v7  ;;  %s840_s16 = smov [#allocation8]  }
  0x5b   : > { %590 = vmatprep.subr.mxu0 %v838_v0  ;;  %601 = vmatprep.subr.mxu1 %v838_v0  ;;  %p765_p1 = pnand %p764_p11, %p1071_p0  ;;  %s767_s22 = sshll.u32 %s840_s16, 4  ;;  %s768_s22 = int_to_ptr.vmem [resolvable:$false] %s767_s22 }
  0x5c   : > { %591 = vmatpush3.msra.mxu0 %v271_v3  ;;  %602 = vmatpush3.msra.mxu1 %v362_v8  ;;  %s769_s14 = scalar_lea.vmem %s768_s22, 256  ;;  %p770_p6 = scmp.lt.s32.totalorder %s467_s30, %s768_s22 }
  0x5d   : > { %592 = vmatprep.subr.mxu0 %v838_v0  ;;  %603 = vmatprep.subr.mxu1 %v838_v0  ;;  %p766_p2 = pneg %p765_p1  ;;  %p771_p12 = scmp.lt.s32.totalorder %s769_s14, %s763_s9 }
  0x5e   : > { %593 = vmatpush3.msra.mxu0 %v270_v4  ;;  %604 = vmatpush3.msra.mxu1 %v361_v9 }
  0x5f   : > { %595 = vmatmul.mubr.msk.f32.vlgmr.msra.gmra.mxu0 %vm281_vm1, %v269_v5  ;;  %p772_p7 = por %p771_p12, %p770_p6 }
  0x61   : > { %p773_p9 = pnand %p772_p7, %p766_p2 }
 0x11f   : > { %v351_v11 = vpop.f32.mrf.mxu0 }
 0x120   : > { %v352_v12 = vadd.f32 %v567_v10, %v351_v11 }
 0x121   : > { %v596_v13 = vpop.f32.mrf.mxu0 }
 0x122   : > { %v356_v14 = vmin.f32 %v352_v12, 0.0  ;;  %vm355_vm2 = vcmp.gt.f32.partialorder %v352_v12, 0.0 }
 0x124   : > { %v357_v15 = vmul.f32 1.442695, %v356_v14 }
 0x126   : > { %679 = vpow2.f32 %v357_v15 }
 0x133   : > { %v680_v16 = vpop.eup %679 }
 0x134   : > { %v569_v17 = vadd.f32 -1.0, %v680_v16 }
 0x136   : > { %v360_v18 = vsel %vm355_vm2, %v352_v12, %v569_v17 }
 0x137   : > { %606 = vmatmul.mubr.msk.f32.vlgmr.msra.gmra.mxu1 %vm281_vm1, %v360_v18 }
 0x1f7   : > { %v441_v20 = vpop.f32.mrf.mxu1 }
 0x1f8   : > { %v442_v21 = vadd.f32 %v570_v19, %v441_v20 }
 0x1f9   : > { %v607_v22 = vpop.f32.mrf.mxu1 }
 0x1fa   : > { %v445_v23 = vmul.f32 %v442_v21, %v442_v21 }
 0x1fc   : > { %v446_v24 = vsel %vm281_vm1, %v445_v23, 0.0 }
 0x1fd   : > { %447 = vadd.xlane.f32.xlu0 %v446_v24 }
 0x286   : > { %v448_v25 = vpop.xlane.xlu0 %447 }
 0x287   : > { %681 = vrsqrt.f32 %v448_v25 }
 0x294   : > { %v682_v26 = vpop.eup %681 }
 0x295   : > { %v450_v27 = vmul.f32 %v682_v26, %v442_v21 }
 0x297   : > { %451 = vst.msk [vmem:[%s268_s12] sm:$0xff] %vm281_vm1, %v450_v27 }
 0x298   : > { %776 = shalt.err (!%p773_p9)
}
 0x299   : > { %s777_s17 = scalar_lea.hbm %s464_s28, 128  ;;  %s781_s26 = scalar_lea.hbm %s1055_s5, 256 }
 0x29a   : > { %p778_p13 = scmp.ne.s32.totalorder %s464_s28, %s777_s17  ;;  %p782_p4 = scmp.lt.s32.totalorder %s464_s28, %s1055_s5 }
 0x29b   : > { %p783_p8 = scmp.lt.s32.totalorder %s781_s26, %s777_s17 }
 0x29c   : > { %p779_p5 = pnand %p778_p13, %p1071_p0 }
 0x29d   : > { %p784_p3 = por %p783_p8, %p782_p4 }
 0x29e   : > { %p780_p10 = pneg %p779_p5 }
 0x2a0   : > { %p785_p11 = pnand %p784_p3, %p780_p10 }
 0x2a2   : > { %788 = shalt.err (!%p785_p11)
}
 0x2a3   : > { %618 = dma.vmem_to_hbm [thread:$0]  (%p1071_p0), %s467_s30, 128, %s464_s28, %s453_s7  }
 0x2a4 PF: > { %s478_s11 = sand.u32 1, %s819_s18   ;;  %p1072_p1 = scmp.ne.s32.totalorder %s1061_s25, 0 }
 0x2a5   : > { %p1073_p2 = scmp.ge.s32.totalorder %s831_s21, 2  ;;  %s479_s12 = scalar_lea.sflag [#allocation4], %s478_s11 }
 0x2a7   : > { %p632_p6 = pnand %p1073_p2, %p1072_p1 }
 0x2a9   : > { %p633_p12 = pneg %p632_p6 }
 0x2ab   : > { %814 = dma.done.wait (%p633_p12), %s479_s12, 128  }
 0x2ac   : > { %816 = vsyncadd (%p633_p12), %s479_s12, 4294967168  ;;  %p19_p7 = scmp.ge.s32.totalorder %s943_s15, 4   ;;  %s1074_s18 = smov %s823_s19 }
 0x2ad   : > { %s1075_s19 = smov %s827_s20  ;;  %s1076_s20 = smov %s959_s27 }
 0x2ae   : > { %s1077_s21 = smov %s943_s15  ;;  %21 = sbr.rel (!%p19_p7) target bundleno = 6 (0x6), region = 93 }
 0x2b3   :  { %484 = vsyncpa [#allocation3], 1 }
 0x2b4   :  { %486 = vsyncpa [#allocation3 + $0x1], 1 }
 0x2b5   :  { %487 = vsyncpa [#allocation6], 1 }
 0x2b6   :  { %488 = vsyncpa [#allocation4], 1 }
 0x2b7   :  { %490 = vsyncpa [#allocation4 + $0x1], 1 }

</bundles_post_ra>
